<compile_context>
chip_gen: v7x
topology: tpu7x:2x2x1
jax: 0.10.0
libtpu: 0.0.40
codegen_flags: <defaults>
</compile_context>

<pallas_src>
import functools

import jax
import jax.numpy as jnp
from jax.experimental import pallas as pl
from jax.experimental.pallas import tpu as pltpu


_DMA_MIN_ROW_BYTES = 512      # per-row contiguous chunk for the HBM->HBM DMA path


def _round_up(a, m):
    return ((a + m - 1) // m) * m


def _vmem_params():
    """(vmem_limit_bytes, per_step_byte_budget) conditioned on the TPU generation."""
    try:
        cap = int(pltpu.get_tpu_info().vmem_capacity_bytes)
    except Exception:
        cap = 64 * 1024 * 1024
    if cap >= 128 * 1024 * 1024:
        # v5e / v6e class: plenty of VMEM, ~0.8-1.4 TB/s HBM -> 4 MiB/step is enough.
        return 64 * 1024 * 1024, 4 * 1024 * 1024
    # v7x class: 64 MiB physical VMEM but ~3.2 TB/s HBM -> bigger steps to amortize
    # the ~0.35us per-step overhead; double-buffered footprint stays << 32 MiB.
    return 32 * 1024 * 1024, 8 * 1024 * 1024


def _choose_fold(R, L, out_L):
    """Fold k rows into the lane axis so each stored output row is lane-dense."""
    if out_L >= 128:
        return 1
    best = 1
    max_k = min(R, 64)
    for k in range(2, max_k + 1):
        if k * out_L > 1024:        # keep super-rows a modest number of vregs wide
            break
        if R % k:                   # reshape (R, L) -> (R/k, k*L) needs k | R
            continue
        best = k
        if k * out_L >= 512:        # >= 4 full vregs of lanes is plenty dense
            break
    return best


def _choose_tile_rows(Rf, in_w, out_w, itemsize, per_step_budget):
    """Row tile sized by bytes moved per grid step, rounded to the sublane multiple."""
    row_mult = 8 * max(1, 4 // itemsize)          # 8 (f32) / 16 (bf16) / 32 (int8)
    per_row = (in_w + out_w) * itemsize
    rows = max(1, per_step_budget // per_row)
    rows = max(row_mult, (rows // row_mult) * row_mult)
    # TODO(synk): if even `row_mult` rows exceed the budget (huge L forced onto this
    # path), an additional L-axis grid would keep blocks small; large L normally
    # takes the DMA-only path instead.
    if rows >= Rf:
        # Everything fits in one step; prefer >= 2 steps so the "parallel" grid
        # axis can shard across v7x's two TensorCores (and overlap DMA on 1-TC parts).
        if Rf >= 2 * row_mult:
            half = _round_up(pl.cdiv(Rf, 2), row_mult)
            if half < Rf:
                return half
        return Rf                   # full-extent block (exempt from (8,128) rule)
    return rows


# ----------------------------------------------------------------------------
# Blocked (BlockSpec-pipelined) path: small / moderate L, row-folded for lane density.
# ----------------------------------------------------------------------------
def _pad_cyclic_fold_kernel(x_ref, o_ref, *, pad, L, k):
    # x_ref block: (rows, k*L); o_ref block: (rows, k*out_L)
    x = x_ref[...]
    out_L = L + 2 * pad
    for r in range(k):                               # static, unrolled
        seg = x[:, r * L:(r + 1) * L]
        base = r * out_L
        o_ref[:, base + pad:base + pad + L] = seg            # center
        o_ref[:, base:base + pad] = seg[:, L - pad:]          # left wrap
        o_ref[:, base + pad + L:base + out_L] = seg[:, :pad]  # right wrap


def _pad_cyclic_blocked(x2, pad, out_L, bytes_accessed):
    R, L = x2.shape
    itemsize = jnp.dtype(x2.dtype).itemsize

    k = _choose_fold(R, L, out_L)
    Rf = R // k
    in_w, out_w = k * L, k * out_L
    x2f = x2.reshape(Rf, in_w)                       # free row-major reshape

    vmem_limit, per_step_budget = _vmem_params()
    tile_rows = _choose_tile_rows(Rf, in_w, out_w, itemsize, per_step_budget)
    grid = (pl.cdiv(Rf, tile_rows),)

    kernel = functools.partial(_pad_cyclic_fold_kernel, pad=pad, L=L, k=k)
    outf = pl.pallas_call(
        kernel,
        out_shape=jax.ShapeDtypeStruct((Rf, out_w), x2.dtype),
        grid_spec=pl.GridSpec(
            grid=grid,
            in_specs=[pl.BlockSpec((tile_rows, in_w), lambda i: (i, 0))],
            out_specs=pl.BlockSpec((tile_rows, out_w), lambda i: (i, 0)),
        ),
        compiler_params=pltpu.CompilerParams(
            dimension_semantics=("parallel",),
            vmem_limit_bytes=vmem_limit,
        ),
        cost_estimate=pl.CostEstimate(
            flops=0, transcendentals=0, bytes_accessed=bytes_accessed),
    )(x2f)
    return outf.reshape(R, out_L)


# ----------------------------------------------------------------------------
# DMA-only path: large L.  Three HBM->HBM async copies, no vreg round trip.
# ----------------------------------------------------------------------------
def _pad_cyclic_dma_kernel(x_hbm, o_hbm, sem, *, pad, L):
    out_L = L + 2 * pad
    center = pltpu.make_async_copy(x_hbm, o_hbm.at[:, pad:pad + L], sem.at[0])
    left = pltpu.make_async_copy(x_hbm.at[:, L - pad:L], o_hbm.at[:, 0:pad], sem.at[1])
    right = pltpu.make_async_copy(x_hbm.at[:, 0:pad], o_hbm.at[:, pad + L:out_L], sem.at[2])
    center.start()
    left.start()
    right.start()
    center.wait()
    left.wait()
    right.wait()


def _pad_cyclic_dma(x2, pad, out_L, bytes_accessed):
    R, L = x2.shape
    kernel = functools.partial(_pad_cyclic_dma_kernel, pad=pad, L=L)
    return pl.pallas_call(
        kernel,
        out_shape=jax.ShapeDtypeStruct((R, out_L), x2.dtype),
        in_specs=[pl.BlockSpec(memory_space=pl.ANY)],
        out_specs=pl.BlockSpec(memory_space=pl.ANY),
        scratch_shapes=[pltpu.SemaphoreType.DMA((3,))],
        cost_estimate=pl.CostEstimate(
            flops=0, transcendentals=0, bytes_accessed=bytes_accessed),
    )(x2)


# ----------------------------------------------------------------------------
# Public wrapper (matches the PyTorch module's forward).
# ----------------------------------------------------------------------------
def pad_cyclic_1d(x, pad, *, use_dma=None):
    """Cyclic pad of `pad` elements on both ends of the last axis of (N, C, L)."""
    N, C, L = x.shape
    if pad == 0:
        return x
    if not (1 <= pad <= L):
        raise ValueError(f"pad must satisfy 0 <= pad <= L (got pad={pad}, L={L})")
    out_L = L + 2 * pad
    R = N * C
    itemsize = jnp.dtype(x.dtype).itemsize
    bytes_accessed = R * (L + out_L) * itemsize

    if use_dma is None:
        # Per-row contiguous chunk large enough for efficient strided HBM->HBM DMA.
        use_dma = (L * itemsize) >= _DMA_MIN_ROW_BYTES

    x2 = x.reshape(R, L)
    if use_dma:
        out2 = _pad_cyclic_dma(x2, pad, out_L, bytes_accessed)
    else:
        out2 = _pad_cyclic_blocked(x2, pad, out_L, bytes_accessed)
    return out2.reshape(N, C, out_L)


def _ref_pad_cyclic(x, pad):
    return jnp.concatenate([x[:, :, -pad:], x, x[:, :, :pad]], axis=-1)


if __name__ == "__main__":
    key0, key1, key2 = jax.random.split(jax.random.PRNGKey(0), 3)

    # 1) Module-consistent small shape (batch=2, channels=4, L=16), f32.
    #    Takes the blocked path with row folding (k=8 -> lane-dense output block).
    x = jax.random.normal(key0, (2, 4, 16), dtype=jnp.float32)
    out = jax.block_until_ready(pad_cyclic_1d(x, 3))
    ref = _ref_pad_cyclic(x, 3)
    assert out.shape == (2, 4, 22), out.shape
    assert jnp.array_equal(out, ref), "f32 mismatch vs reference"

    # 2) Odd row count (N*C = 15) and bf16 dtype -> folded path, ragged-safe.
    x2 = jax.random.normal(key1, (3, 5, 40), dtype=jnp.bfloat16)
    out2 = jax.block_until_ready(pad_cyclic_1d(x2, 5))
    assert out2.shape == (3, 5, 50), out2.shape
    assert jnp.array_equal(out2, _ref_pad_cyclic(x2, 5)), "bf16 mismatch vs reference"

    # 3) Larger L (>= 512 B per row) -> DMA-only HBM->HBM path.
    x3 = jax.random.normal(key2, (2, 3, 256), dtype=jnp.float32)
    out3 = jax.block_until_ready(pad_cyclic_1d(x3, 4))
    assert out3.shape == (2, 3, 264), out3.shape
    assert jnp.array_equal(out3, _ref_pad_cyclic(x3, 4)), "DMA-path mismatch vs reference"

    # 3b) Same shape forced onto the blocked path (k=1, out_L >= 128 branch).
    out3b = jax.block_until_ready(pad_cyclic_1d(x3, 4, use_dma=False))
    assert jnp.array_equal(out3b, _ref_pad_cyclic(x3, 4)), "blocked-path mismatch vs reference"

    print("KERNEL_OK")
</pallas_src>

<mosaic_0001>
module attributes {stable_mosaic.version = 11 : i64} {
  func.func @_pad_cyclic_fold_kernel(%arg0: i32, %arg1: memref<1x128xf32, #tpu.memory_space<vmem>>, %arg2: memref<1x176xf32, #tpu.memory_space<vmem>>) attributes {dimension_semantics = [#tpu.dimension_semantics<parallel>], iteration_bounds = array<i64: 1>, scalar_prefetch = 0 : i64, scratch_operands = 0 : i64, tpu.core_type = #tpu.core_type<tc>, window_params = [{transform_indices = @transform_0, window_bounds = array<i64: 1, 128>}, {transform_indices = @transform_1, window_bounds = array<i64: 1, 176>}]} {
    %c0 = arith.constant 0 : index
    %c0_0 = arith.constant 0 : index
    %0 = vector.load %arg1[%c0, %c0_0] : memref<1x128xf32, #tpu.memory_space<vmem>>, vector<1x128xf32>
    %1 = vector.extract_strided_slice %0 {offsets = [0, 0], sizes = [1, 16], strides = [1, 1]} : vector<1x128xf32> to vector<1x16xf32>
    %c0_1 = arith.constant 0 : index
    %c3 = arith.constant 3 : index
    %2 = vector.load %arg2[%c0_1, %c3] : memref<1x176xf32, #tpu.memory_space<vmem>>, vector<1x16xf32>
    tpu.vector_store %arg2[%c0_1, %c3], %1 {strides = array<i32>} : memref<1x176xf32, #tpu.memory_space<vmem>>, vector<1x16xf32>,
    %3 = vector.extract_strided_slice %1 {offsets = [0, 13], sizes = [1, 3], strides = [1, 1]} : vector<1x16xf32> to vector<1x3xf32>
    %c0_2 = arith.constant 0 : index
    %c0_3 = arith.constant 0 : index
    %4 = vector.load %arg2[%c0_2, %c0_3] : memref<1x176xf32, #tpu.memory_space<vmem>>, vector<1x3xf32>
    tpu.vector_store %arg2[%c0_2, %c0_3], %3 {strides = array<i32>} : memref<1x176xf32, #tpu.memory_space<vmem>>, vector<1x3xf32>,
    %5 = vector.extract_strided_slice %1 {offsets = [0, 0], sizes = [1, 3], strides = [1, 1]} : vector<1x16xf32> to vector<1x3xf32>
    %c0_4 = arith.constant 0 : index
    %c19 = arith.constant 19 : index
    %6 = vector.load %arg2[%c0_4, %c19] : memref<1x176xf32, #tpu.memory_space<vmem>>, vector<1x3xf32>
    tpu.vector_store %arg2[%c0_4, %c19], %5 {strides = array<i32>} : memref<1x176xf32, #tpu.memory_space<vmem>>, vector<1x3xf32>,
    %7 = vector.extract_strided_slice %0 {offsets = [0, 16], sizes = [1, 16], strides = [1, 1]} : vector<1x128xf32> to vector<1x16xf32>
    %c0_5 = arith.constant 0 : index
    %c25 = arith.constant 25 : index
    %8 = vector.load %arg2[%c0_5, %c25] : memref<1x176xf32, #tpu.memory_space<vmem>>, vector<1x16xf32>
    tpu.vector_store %arg2[%c0_5, %c25], %7 {strides = array<i32>} : memref<1x176xf32, #tpu.memory_space<vmem>>, vector<1x16xf32>,
    %9 = vector.extract_strided_slice %7 {offsets = [0, 13], sizes = [1, 3], strides = [1, 1]} : vector<1x16xf32> to vector<1x3xf32>
    %c0_6 = arith.constant 0 : index
    %c22 = arith.constant 22 : index
    %10 = vector.load %arg2[%c0_6, %c22] : memref<1x176xf32, #tpu.memory_space<vmem>>, vector<1x3xf32>
    tpu.vector_store %arg2[%c0_6, %c22], %9 {strides = array<i32>} : memref<1x176xf32, #tpu.memory_space<vmem>>, vector<1x3xf32>,
    %11 = vector.extract_strided_slice %7 {offsets = [0, 0], sizes = [1, 3], strides = [1, 1]} : vector<1x16xf32> to vector<1x3xf32>
    %c0_7 = arith.constant 0 : index
    %c41 = arith.constant 41 : index
    %12 = vector.load %arg2[%c0_7, %c41] : memref<1x176xf32, #tpu.memory_space<vmem>>, vector<1x3xf32>
    tpu.vector_store %arg2[%c0_7, %c41], %11 {strides = array<i32>} : memref<1x176xf32, #tpu.memory_space<vmem>>, vector<1x3xf32>,
    %13 = vector.extract_strided_slice %0 {offsets = [0, 32], sizes = [1, 16], strides = [1, 1]} : vector<1x128xf32> to vector<1x16xf32>
    %c0_8 = arith.constant 0 : index
    %c47 = arith.constant 47 : index
    %14 = vector.load %arg2[%c0_8, %c47] : memref<1x176xf32, #tpu.memory_space<vmem>>, vector<1x16xf32>
    tpu.vector_store %arg2[%c0_8, %c47], %13 {strides = array<i32>} : memref<1x176xf32, #tpu.memory_space<vmem>>, vector<1x16xf32>,
    %15 = vector.extract_strided_slice %13 {offsets = [0, 13], sizes = [1, 3], strides = [1, 1]} : vector<1x16xf32> to vector<1x3xf32>
    %c0_9 = arith.constant 0 : index
    %c44 = arith.constant 44 : index
    %16 = vector.load %arg2[%c0_9, %c44] : memref<1x176xf32, #tpu.memory_space<vmem>>, vector<1x3xf32>
    tpu.vector_store %arg2[%c0_9, %c44], %15 {strides = array<i32>} : memref<1x176xf32, #tpu.memory_space<vmem>>, vector<1x3xf32>,
    %17 = vector.extract_strided_slice %13 {offsets = [0, 0], sizes = [1, 3], strides = [1, 1]} : vector<1x16xf32> to vector<1x3xf32>
    %c0_10 = arith.constant 0 : index
    %c63 = arith.constant 63 : index
    %18 = vector.load %arg2[%c0_10, %c63] : memref<1x176xf32, #tpu.memory_space<vmem>>, vector<1x3xf32>
    tpu.vector_store %arg2[%c0_10, %c63], %17 {strides = array<i32>} : memref<1x176xf32, #tpu.memory_space<vmem>>, vector<1x3xf32>,
    %19 = vector.extract_strided_slice %0 {offsets = [0, 48], sizes = [1, 16], strides = [1, 1]} : vector<1x128xf32> to vector<1x16xf32>
    %c0_11 = arith.constant 0 : index
    %c69 = arith.constant 69 : index
    %20 = vector.load %arg2[%c0_11, %c69] : memref<1x176xf32, #tpu.memory_space<vmem>>, vector<1x16xf32>
    tpu.vector_store %arg2[%c0_11, %c69], %19 {strides = array<i32>} : memref<1x176xf32, #tpu.memory_space<vmem>>, vector<1x16xf32>,
    %21 = vector.extract_strided_slice %19 {offsets = [0, 13], sizes = [1, 3], strides = [1, 1]} : vector<1x16xf32> to vector<1x3xf32>
    %c0_12 = arith.constant 0 : index
    %c66 = arith.constant 66 : index
    %22 = vector.load %arg2[%c0_12, %c66] : memref<1x176xf32, #tpu.memory_space<vmem>>, vector<1x3xf32>
    tpu.vector_store %arg2[%c0_12, %c66], %21 {strides = array<i32>} : memref<1x176xf32, #tpu.memory_space<vmem>>, vector<1x3xf32>,
    %23 = vector.extract_strided_slice %19 {offsets = [0, 0], sizes = [1, 3], strides = [1, 1]} : vector<1x16xf32> to vector<1x3xf32>
    %c0_13 = arith.constant 0 : index
    %c85 = arith.constant 85 : index
    %24 = vector.load %arg2[%c0_13, %c85] : memref<1x176xf32, #tpu.memory_space<vmem>>, vector<1x3xf32>
    tpu.vector_store %arg2[%c0_13, %c85], %23 {strides = array<i32>} : memref<1x176xf32, #tpu.memory_space<vmem>>, vector<1x3xf32>,
    %25 = vector.extract_strided_slice %0 {offsets = [0, 64], sizes = [1, 16], strides = [1, 1]} : vector<1x128xf32> to vector<1x16xf32>
    %c0_14 = arith.constant 0 : index
    %c91 = arith.constant 91 : index
    %26 = vector.load %arg2[%c0_14, %c91] : memref<1x176xf32, #tpu.memory_space<vmem>>, vector<1x16xf32>
    tpu.vector_store %arg2[%c0_14, %c91], %25 {strides = array<i32>} : memref<1x176xf32, #tpu.memory_space<vmem>>, vector<1x16xf32>,
    %27 = vector.extract_strided_slice %25 {offsets = [0, 13], sizes = [1, 3], strides = [1, 1]} : vector<1x16xf32> to vector<1x3xf32>
    %c0_15 = arith.constant 0 : index
    %c88 = arith.constant 88 : index
    %28 = vector.load %arg2[%c0_15, %c88] : memref<1x176xf32, #tpu.memory_space<vmem>>, vector<1x3xf32>
    tpu.vector_store %arg2[%c0_15, %c88], %27 {strides = array<i32>} : memref<1x176xf32, #tpu.memory_space<vmem>>, vector<1x3xf32>,
    %29 = vector.extract_strided_slice %25 {offsets = [0, 0], sizes = [1, 3], strides = [1, 1]} : vector<1x16xf32> to vector<1x3xf32>
    %c0_16 = arith.constant 0 : index
    %c107 = arith.constant 107 : index
    %30 = vector.load %arg2[%c0_16, %c107] : memref<1x176xf32, #tpu.memory_space<vmem>>, vector<1x3xf32>
    tpu.vector_store %arg2[%c0_16, %c107], %29 {strides = array<i32>} : memref<1x176xf32, #tpu.memory_space<vmem>>, vector<1x3xf32>,
    %31 = vector.extract_strided_slice %0 {offsets = [0, 80], sizes = [1, 16], strides = [1, 1]} : vector<1x128xf32> to vector<1x16xf32>
    %c0_17 = arith.constant 0 : index
    %c113 = arith.constant 113 : index
    %32 = vector.load %arg2[%c0_17, %c113] : memref<1x176xf32, #tpu.memory_space<vmem>>, vector<1x16xf32>
    tpu.vector_store %arg2[%c0_17, %c113], %31 {strides = array<i32>} : memref<1x176xf32, #tpu.memory_space<vmem>>, vector<1x16xf32>,
    %33 = vector.extract_strided_slice %31 {offsets = [0, 13], sizes = [1, 3], strides = [1, 1]} : vector<1x16xf32> to vector<1x3xf32>
    %c0_18 = arith.constant 0 : index
    %c110 = arith.constant 110 : index
    %34 = vector.load %arg2[%c0_18, %c110] : memref<1x176xf32, #tpu.memory_space<vmem>>, vector<1x3xf32>
    tpu.vector_store %arg2[%c0_18, %c110], %33 {strides = array<i32>} : memref<1x176xf32, #tpu.memory_space<vmem>>, vector<1x3xf32>,
    %35 = vector.extract_strided_slice %31 {offsets = [0, 0], sizes = [1, 3], strides = [1, 1]} : vector<1x16xf32> to vector<1x3xf32>
    %c0_19 = arith.constant 0 : index
    %c129 = arith.constant 129 : index
    %36 = vector.load %arg2[%c0_19, %c129] : memref<1x176xf32, #tpu.memory_space<vmem>>, vector<1x3xf32>
    tpu.vector_store %arg2[%c0_19, %c129], %35 {strides = array<i32>} : memref<1x176xf32, #tpu.memory_space<vmem>>, vector<1x3xf32>,
    %37 = vector.extract_strided_slice %0 {offsets = [0, 96], sizes = [1, 16], strides = [1, 1]} : vector<1x128xf32> to vector<1x16xf32>
    %c0_20 = arith.constant 0 : index
    %c135 = arith.constant 135 : index
    %38 = vector.load %arg2[%c0_20, %c135] : memref<1x176xf32, #tpu.memory_space<vmem>>, vector<1x16xf32>
    tpu.vector_store %arg2[%c0_20, %c135], %37 {strides = array<i32>} : memref<1x176xf32, #tpu.memory_space<vmem>>, vector<1x16xf32>,
    %39 = vector.extract_strided_slice %37 {offsets = [0, 13], sizes = [1, 3], strides = [1, 1]} : vector<1x16xf32> to vector<1x3xf32>
    %c0_21 = arith.constant 0 : index
    %c132 = arith.constant 132 : index
    %40 = vector.load %arg2[%c0_21, %c132] : memref<1x176xf32, #tpu.memory_space<vmem>>, vector<1x3xf32>
    tpu.vector_store %arg2[%c0_21, %c132], %39 {strides = array<i32>} : memref<1x176xf32, #tpu.memory_space<vmem>>, vector<1x3xf32>,
    %41 = vector.extract_strided_slice %37 {offsets = [0, 0], sizes = [1, 3], strides = [1, 1]} : vector<1x16xf32> to vector<1x3xf32>
    %c0_22 = arith.constant 0 : index
    %c151 = arith.constant 151 : index
    %42 = vector.load %arg2[%c0_22, %c151] : memref<1x176xf32, #tpu.memory_space<vmem>>, vector<1x3xf32>
    tpu.vector_store %arg2[%c0_22, %c151], %41 {strides = array<i32>} : memref<1x176xf32, #tpu.memory_space<vmem>>, vector<1x3xf32>,
    %43 = vector.extract_strided_slice %0 {offsets = [0, 112], sizes = [1, 16], strides = [1, 1]} : vector<1x128xf32> to vector<1x16xf32>
    %c0_23 = arith.constant 0 : index
    %c157 = arith.constant 157 : index
    %44 = vector.load %arg2[%c0_23, %c157] : memref<1x176xf32, #tpu.memory_space<vmem>>, vector<1x16xf32>
    tpu.vector_store %arg2[%c0_23, %c157], %43 {strides = array<i32>} : memref<1x176xf32, #tpu.memory_space<vmem>>, vector<1x16xf32>,
    %45 = vector.extract_strided_slice %43 {offsets = [0, 13], sizes = [1, 3], strides = [1, 1]} : vector<1x16xf32> to vector<1x3xf32>
    %c0_24 = arith.constant 0 : index
    %c154 = arith.constant 154 : index
    %46 = vector.load %arg2[%c0_24, %c154] : memref<1x176xf32, #tpu.memory_space<vmem>>, vector<1x3xf32>
    tpu.vector_store %arg2[%c0_24, %c154], %45 {strides = array<i32>} : memref<1x176xf32, #tpu.memory_space<vmem>>, vector<1x3xf32>,
    %47 = vector.extract_strided_slice %43 {offsets = [0, 0], sizes = [1, 3], strides = [1, 1]} : vector<1x16xf32> to vector<1x3xf32>
    %c0_25 = arith.constant 0 : index
    %c173 = arith.constant 173 : index
    %48 = vector.load %arg2[%c0_25, %c173] : memref<1x176xf32, #tpu.memory_space<vmem>>, vector<1x3xf32>
    tpu.vector_store %arg2[%c0_25, %c173], %47 {strides = array<i32>} : memref<1x176xf32, #tpu.memory_space<vmem>>, vector<1x3xf32>,
    return
  }
  func.func @transform_0(%arg0: i32) -> (i32, i32) {
    %c0_i32 = arith.constant 0 : i32
    %c0_i32_0 = arith.constant 0 : i32
    return %arg0, %c0_i32 : i32, i32
  }
  func.func @transform_1(%arg0: i32) -> (i32, i32) {
    %c0_i32 = arith.constant 0 : i32
    %c0_i32_0 = arith.constant 0 : i32
    return %arg0, %c0_i32 : i32, i32
  }
}

</mosaic_0001>

<bundles_post_ra>
// kernel: tpu_custom_call.1
= control target key start
LH: loop header
LB: loop body
LE: loop exit
PB: predicated region body
PF: predicated region fallthrough
CT: control target
= control target key end

     0   :  { %6 = vsyncpa [#allocation3], 0  ;;  %s535_s0 = inlined_call_operand.hbm [shape: f32[1,128], index: 0, kind: input, shape index: {}]   ;;  %s536_s1 = inlined_call_operand.hbm [shape: f32[1,176], index: 1, kind: output, shape index: {}]  }
   0x1   :  { %7 = vsyncpa [#allocation4], 0  ;;  %s284_s6 = smov [#allocation2]   ;;  %s236_s10 = scalar_lea.hbm %s535_s0, 16 }
   0x2   :  { %s14_s7 = sshll.u32 %s284_s6, 4  ;;  %p237_p0 = scmp.ne.s32.totalorder %s535_s0, %s236_s10  ;;  %s15_s7 = int_to_ptr.vmem [resolvable:$true] %s14_s7 }
   0x3   :  { %p240_p1 = scmp.lt.u32.totalorder %s236_s10, %s535_s0 }
   0x5   :  { %p242_p2 = pnand %p240_p1, %p237_p0 }
   0x7   :  { %245 = shalt.err (!%p242_p2)
}
   0x8   :  { %s246_s15 = scalar_lea.vmem %s15_s7, 16  ;;  %s250_s16 = scalar_lea.vmem %s15_s7, 32 }
   0x9   :  { %p247_p3 = scmp.ne.s32.totalorder %s15_s7, %s246_s15  ;;  %p251_p4 = scmp.lt.s32.totalorder %s15_s7, %s15_s7 }
   0xa   :  { %p252_p5 = scmp.lt.s32.totalorder %s250_s16, %s246_s15 }
   0xc   :  { %p253_p6 = por %p252_p5, %p251_p4 }
   0xe   :  { %p254_p7 = pnand %p253_p6, %p247_p3 }
  0x10   :  { %257 = shalt.err (!%p254_p7)
}
  0x11   :  { %17 = dma.hbm_to_vmem [thread:$0]  %s535_s0, 16, %s15_s7, [#allocation3]  }
  0x12   :  { %280 = dma.done.wait [#allocation3], 16  }
  0x13   :  { %281 = vsyncadd [#allocation3], 4294967280  ;;  %v21_v0 = vld [vmem:[#allocation2] sm:$0x1]  ;;  %s285_s19 = smov 19   ;;  %s286_s20 = smov 3   ;;  %v26_v1 = vlaneseq }
  0x14   :  { %38 = vrot.lane.b32.xlu1 %v21_v0, %s285_s19  ;;  %23 = vrot.lane.b32.xlu0 %v21_v0, %s286_s20  ;;  %s287_s21 = smov 9   ;;  %s288_s22 = smov 115  }
  0x15   :  { %s289_s23 = smov 25   ;;  %s290_s24 = smov 121   ;;  %vm27_vm0 = vcmp.ge.s32.totalorder %v26_v1, 3  ;;  %vm28_vm1 = vcmp.lt.s32.totalorder %v26_v1, 19  ;;  %vm335_vm3 = vcmp.ge.s32.totalorder %v26_v1, 19  ;;  %vm42_vm4 = vcmp.lt.s32.totalorder %v26_v1, 22 }
  0x16   :  { %s291_s25 = smov 127   ;;  %s292_s26 = smov 15   ;;  %vm29_vm2 = vmand %vm27_vm0, %vm28_vm1  ;;  %vm48_vm5 = vcmp.ge.s32.totalorder %v26_v1, 25  ;;  %vm49_vm6 = vcmp.lt.s32.totalorder %v26_v1, 41  ;;  %vm35_vm7 = vcmp.lt.s32.totalorder %v26_v1, 3  ;;  %vm346_vm9 = vcmp.ge.s32.totalorder %v26_v1, 22 }
  0x17   :  { %s293_s0 = smov 21   ;;  %s294_s27 = smov 31   ;;  %vm43_vm8 = vmand %vm335_vm3, %vm42_vm4  ;;  %vm351_vm10 = vcmp.lt.s32.totalorder %v26_v1, 25  ;;  %vm62_vm12 = vcmp.ge.s32.totalorder %v26_v1, 41  ;;  %vm63_vm13 = vcmp.lt.s32.totalorder %v26_v1, 44  ;;  %vm362_vm0 = vcmp.ge.s32.totalorder %v26_v1, 47 }
  0x18   :  { %45 = vrot.lane.b32.xlu1 %v21_v0, %s287_s21  ;;  %31 = vrot.lane.b32.xlu0 %v21_v0, %s288_s22  ;;  %s295_s28 = smov 37   ;;  %s296_s29 = smov 5   ;;  %vm50_vm11 = vmand %vm48_vm5, %vm49_vm6  ;;  %vm367_vm1 = vcmp.lt.s32.totalorder %v26_v1, 63  ;;  %vm77_vm3 = vcmp.lt.s32.totalorder %v26_v1, 47  ;;  %vm378_vm6 = vcmp.ge.s32.totalorder %v26_v1, 63 }
  0x19   :  { %s297_s30 = smov 33   ;;  %s298_s2 = smov 27   ;;  %vm57_vm14 = vmand %vm346_vm9, %vm351_vm10  ;;  %vm91_vm9 = vcmp.lt.s32.totalorder %v26_v1, 85 }
  0x1a   :  { %s299_s3 = smov 43   ;;  %s300_s4 = smov 11   ;;  %vm64_vm15 = vmand %vm62_vm12, %vm63_vm13  ;;  %vm97_vm12 = vcmp.ge.s32.totalorder %v26_v1, 66  ;;  %vm98_vm13 = vcmp.lt.s32.totalorder %v26_v1, 69 }
  0x1b   :  { %s301_s5 = smov 39   ;;  %s302_s6 = smov 49   ;;  %vm71_vm4 = vmand %vm362_vm0, %vm367_vm1 }
  0x1c   :  { %59 = vrot.lane.b32.xlu1 %v21_v0, %s289_s23  ;;  %52 = vrot.lane.b32.xlu0 %v21_v0, %s290_s24  ;;  %s303_s7 = smov 55   ;;  %s304_s8 = smov 23   ;;  %vm99_vm0 = vmand %vm97_vm12, %vm98_vm13  ;;  %vm132_vm12 = vcmask 269312  }
  0x1d   :  { %s305_s9 = smov 29   ;;  %s306_s10 = smov 45  }
  0x1e   :  { %s307_s11 = smov 61   ;;  %s308_s12 = smov 17  }
  0x1f   :  { %s309_s13 = smov [#allocation5]  }
  0x20   :  { %73 = vrot.lane.b32.xlu1 %v21_v0, %s291_s25  ;;  %66 = vrot.lane.b32.xlu0 %v21_v0, %s292_s26  ;;  %s201_s14 = sshll.u32 %s309_s13, 4  ;;  %s202_s14 = int_to_ptr.vmem [resolvable:$true] %s201_s14 }
  0x21   :  { %s258_s15 = scalar_lea.vmem %s202_s14, 32  ;;  %p263_p9 = scmp.lt.s32.totalorder %s202_s14, %s202_s14 }
  0x22   :  { %p259_p8 = scmp.ne.s32.totalorder %s202_s14, %s258_s15  ;;  %p264_p10 = scmp.lt.s32.totalorder %s258_s15, %s258_s15 }
  0x24   :  { %87 = vrot.lane.b32.xlu1 %v21_v0, %s293_s0  ;;  %80 = vrot.lane.b32.xlu0 %v21_v0, %s294_s27  ;;  %p265_p11 = por %p264_p10, %p263_p9 }
  0x26   :  { %p266_p12 = pnand %p265_p11, %p259_p8 }
  0x28   :  { %101 = vrot.lane.b32.xlu1 %v21_v0, %s295_s28  ;;  %94 = vrot.lane.b32.xlu0 %v21_v0, %s296_s29 }
  0x2c   :  { %129 = vrot.lane.b32.xlu1 %v21_v0, %s297_s30  ;;  %108 = vrot.lane.b32.xlu0 %v21_v0, %s298_s2 }
  0x30   :  { %122 = vrot.lane.b32.xlu1 %v21_v0, %s299_s3  ;;  %115 = vrot.lane.b32.xlu0 %v21_v0, %s300_s4 }
  0x34   :  { %153 = vrot.lane.b32.xlu1 %v21_v0, %s301_s5  ;;  %146 = vrot.lane.b32.xlu0 %v21_v0, %s302_s6 }
  0x38   :  { %167 = vrot.lane.b32.xlu1 %v21_v0, %s303_s7  ;;  %160 = vrot.lane.b32.xlu0 %v21_v0, %s304_s8 }
  0x3c   :  { %181 = vrot.lane.b32.xlu1 %v21_v0, %s305_s9  ;;  %174 = vrot.lane.b32.xlu0 %v21_v0, %s306_s10 }
  0x40   :  { %188 = vrot.lane.b32.xlu1 %v21_v0, %s307_s11  ;;  %139 = vrot.lane.b32.xlu0 %v21_v0, %s308_s12 }
  0x86   :  { %v39_v2 = vpop.permute.xlu1 %38  ;;  %v24_v3 = vpop.permute.xlu0 %23 }
  0x87   :  { %30 = vst.msk [vmem:[#allocation5] sm:$0x1] %vm29_vm2, %v24_v3  ;;  %vm76_vm2 = vcmp.ge.s32.totalorder %v26_v1, 44 }
  0x88   :  { %vm78_vm5 = vmand %vm76_vm2, %vm77_vm3  ;;  %vm111_vm2 = vcmp.ge.s32.totalorder %v26_v1, 91  ;;  %vm112_vm3 = vcmp.lt.s32.totalorder %v26_v1, 107 }
  0x8a   :  { %v46_v7 = vpop.permute.xlu1 %45  ;;  %v32_v8 = vpop.permute.xlu0 %31 }
  0x8b   :  { %37 = vst.msk [vmem:[#allocation5] sm:$0x1] %vm35_vm7, %v32_v8  ;;  %vm383_vm7 = vcmp.lt.s32.totalorder %v26_v1, 66 }
  0x8c   :  { %44 = vst.msk [vmem:[#allocation5] sm:$0x1] %vm43_vm8, %v39_v2  ;;  %vm90_vm8 = vcmp.ge.s32.totalorder %v26_v1, 69  ;;  %vm85_vm10 = vmand %vm378_vm6, %vm383_vm7  ;;  %vm405_vm6 = vcmp.lt.s32.totalorder %v26_v1, 91  ;;  %vm410_vm7 = vcmp.ge.s32.totalorder %v26_v1, 107 }
  0x8d   :  { %51 = vst.msk [vmem:[#allocation5] sm:$0x1] %vm50_vm11, %v46_v7  ;;  %vm92_vm11 = vmand %vm90_vm8, %vm91_vm9  ;;  %vm415_vm8 = vcmp.lt.s32.totalorder %v26_v1, 110  ;;  %vm420_vm9 = vcmp.ge.s32.totalorder %v26_v1, 113 }
  0x8e   :  { %v60_v11 = vpop.permute.xlu1 %59  ;;  %v53_v12 = vpop.permute.xlu0 %52  ;;  %vm127_vm13 = vmand %vm410_vm7, %vm415_vm8  ;;  %vm170_vm7 = vcmp.ge.s32.totalorder %v26_v1, 23  ;;  %vm171_vm8 = vcmp.lt.s32.totalorder %v26_v1, 26 }
  0x8f   :  { %58 = vst.msk [vmem:[#allocation5] sm:$0x1] %vm57_vm14, %v53_v12  ;;  %vm104_vm14 = vcmp.ge.s32.totalorder %v26_v1, 85 }
  0x90   :  { %65 = vst.msk [vmem:[#allocation5] sm:$0x1] %vm64_vm15, %v60_v11  ;;  %vm105_vm15 = vcmp.lt.s32.totalorder %v26_v1, 88 }
  0x91   :  { %vm106_vm1 = vmand %vm104_vm14, %vm105_vm15  ;;  %vm438_vm14 = vcmp.ge.s32.totalorder %v26_v1, 1  ;;  %vm443_vm15 = vcmp.lt.s32.totalorder %v26_v1, 4 }
  0x92   :  { %v74_v15 = vpop.permute.xlu1 %73  ;;  %v67_v16 = vpop.permute.xlu0 %66 }
  0x93   :  { %72 = vst.msk [vmem:[#allocation5] sm:$0x1] %vm71_vm4, %v67_v16  ;;  %vm113_vm4 = vmand %vm111_vm2, %vm112_vm3  ;;  %vm157_vm2 = vcmp.lt.s32.totalorder %v26_v1, 23 }
  0x94   :  { %79 = vst.msk [vmem:[#allocation5] sm:$0x1] %vm78_vm5, %v74_v15  ;;  %vm400_vm5 = vcmp.ge.s32.totalorder %v26_v1, 88  ;;  %vm151_vm3 = vmand %vm438_vm14, %vm443_vm15  ;;  %vm495_vm14 = vcmp.lt.s32.totalorder %v26_v1, 29 }
  0x96   :  { %v88_v17 = vpop.permute.xlu1 %87  ;;  %v81_v18 = vpop.permute.xlu0 %80 }
  0x97   :  { %86 = vst.msk [vmem:[#allocation5] sm:$0x1] %vm85_vm10, %v81_v18  ;;  %vm425_vm10 = vcmp.lt.s32.totalorder %v26_v1, 129 }
  0x98   :  { %93 = vst.msk [vmem:[#allocation5] sm:$0x1] %vm92_vm11, %v88_v17  ;;  %vm120_vm11 = vmand %vm400_vm5, %vm405_vm6  ;;  %vm464_vm5 = vcmp.ge.s32.totalorder %v26_v1, 4  ;;  %vm469_vm6 = vcmp.lt.s32.totalorder %v26_v1, 7 }
  0x9a   :  { %v102_v19 = vpop.permute.xlu1 %101  ;;  %v95_v20 = vpop.permute.xlu0 %94 }
  0x9b   :  { %100 = vst.msk [vmem:[#allocation5] sm:$0x1] %vm99_vm0, %v95_v20  ;;  %vm137_vm0 = vmand %vm420_vm9, %vm425_vm10 }
  0x9c   :  { %107 = vst.msk [vmem:[#allocation5] sm:$0x1] %vm106_vm1, %v102_v19  ;;  %vm452_vm1 = vcmp.ge.s32.totalorder %v26_v1, 7  ;;  %vm165_vm9 = vmand %vm464_vm5, %vm469_vm6 }
  0x9d   :  { %vm172_vm10 = vmand %vm170_vm7, %vm171_vm8 }
  0x9e   :  { %v130_v23 = vpop.permute.xlu1 %129  ;;  %v109_v24 = vpop.permute.xlu0 %108 }
  0x9f   :  { %114 = vst.msk [vmem:[#allocation5] sm:$0x1] %vm113_vm4, %v109_v24  ;;  %v131_v29 = vrot.slane %v130_v23, 7  ;;  %vm158_vm4 = vmand %vm452_vm1, %vm157_vm2  ;;  %vm509_vm1 = vcmp.lt.s32.totalorder %v26_v1, 113 }
  0xa1   :  { %v133_v35 = vsel %vm132_vm12, %v131_v29, %v130_v23  ;;  %vm485_vm12 = vcmp.lt.s32.totalorder %v26_v1, 45 }
  0xa2   :  { %v123_v32 = vpop.permute.xlu1 %122  ;;  %v116_v33 = vpop.permute.xlu0 %115 }
  0xa3   :  { %121 = vst.msk [vmem:[#allocation5] sm:$0x1] %vm120_vm11, %v116_v33  ;;  %vm480_vm11 = vcmp.ge.s32.totalorder %v26_v1, 29 }
  0xa4   :  { %128 = vst.msk [vmem:[#allocation5] sm:$0x1] %vm127_vm13, %v123_v32  ;;  %vm490_vm13 = vcmp.ge.s32.totalorder %v26_v1, 26  ;;  %vm179_vm15 = vmand %vm480_vm11, %vm485_vm12 }
  0xa5   :  { %138 = vst.msk [vmem:[#allocation5] sm:$0x3] %vm137_vm0, %v133_v35  ;;  %vm504_vm0 = vcmp.ge.s32.totalorder %v26_v1, 110  ;;  %vm186_vm2 = vmand %vm490_vm13, %vm495_vm14 }
  0xa6   :  { %v154_v38 = vpop.permute.xlu1 %153  ;;  %v147_v39 = vpop.permute.xlu0 %146  ;;  %vm144_vm5 = vmand %vm504_vm0, %vm509_vm1 }
  0xa7   :  { %152 = vst.msk [vmem:[#allocation5 + $0x1] sm:$0x1] %vm151_vm3, %v147_v39  ;;  %vm191_vm3 = vcmp.ge.s32.totalorder %v26_v1, 45 }
  0xa8   :  { %159 = vst.msk [vmem:[#allocation5 + $0x1] sm:$0x1] %vm158_vm4, %v154_v38  ;;  %vm192_vm4 = vcmp.lt.s32.totalorder %v26_v1, 48 }
  0xa9   :  { %vm193_vm6 = vmand %vm191_vm3, %vm192_vm4 }
  0xaa   :  { %v168_v42 = vpop.permute.xlu1 %167  ;;  %v161_v43 = vpop.permute.xlu0 %160 }
  0xab   :  { %166 = vst.msk [vmem:[#allocation5 + $0x1] sm:$0x1] %vm165_vm9, %v161_v43 }
  0xac   :  { %173 = vst.msk [vmem:[#allocation5 + $0x1] sm:$0x1] %vm172_vm10, %v168_v42 }
  0xae   :  { %v182_v48 = vpop.permute.xlu1 %181  ;;  %v175_v49 = vpop.permute.xlu0 %174 }
  0xaf   :  { %180 = vst.msk [vmem:[#allocation5 + $0x1] sm:$0x1] %vm179_vm15, %v175_v49 }
  0xb0   :  { %187 = vst.msk [vmem:[#allocation5 + $0x1] sm:$0x1] %vm186_vm2, %v182_v48 }
  0xb2   :  { %v189_v50 = vpop.permute.xlu1 %188  ;;  %v140_v51 = vpop.permute.xlu0 %139 }
  0xb3   :  { %145 = vst.msk [vmem:[#allocation5] sm:$0x1] %vm144_vm5, %v140_v51 }
  0xb4   :  { %194 = vst.msk [vmem:[#allocation5 + $0x1] sm:$0x1] %vm193_vm6, %v189_v50 }
  0xb5   :  { %269 = shalt.err (!%p266_p12)
}
  0xb6   :  { %s270_s18 = scalar_lea.hbm %s536_s1, 32 }
  0xb7   :  { %p271_p13 = scmp.ne.s32.totalorder %s536_s1, %s270_s18  ;;  %p274_p0 = scmp.lt.u32.totalorder %s270_s18, %s536_s1 }
  0xb9   :  { %p276_p1 = pnand %p274_p0, %p271_p13 }
  0xbb   :  { %279 = shalt.err (!%p276_p1)
}
  0xbc   :  { %204 = dma.vmem_to_hbm [thread:$0]  %s202_s14, 32, %s536_s1, [#allocation4]  }
  0xbd   :  { %282 = dma.done.wait [#allocation4], 32  }
  0xbe   :  { %283 = vsyncadd [#allocation4], 4294967264 }
  0xbf   :  { %208 = vsyncpa [#allocation3], 1 }
  0xc0   :  { %209 = vsyncpa [#allocation4], 1 }

</bundles_post_ra>
